<compile_context>
chip_gen: v5e
topology: v5e:2x2
jax: 0.10.0
libtpu: 0.0.40
codegen_flags: <defaults>
</compile_context>

<pallas_src>
import functools

import jax
import jax.numpy as jnp
from jax.experimental import pallas as pl
from jax.experimental.pallas import tpu as pltpu


# ----------------------------------------------------------------------------
# Config (consistent with the module's __init__)
# ----------------------------------------------------------------------------
CONFIG = dict(
    num_rating=5,
    embedding_dim=32,
    user_embedding_dim=32,
    item_embedding_dim=32,
    Encoder_layer_1=64,
    Encoder_layer_2=32,
    Decoder_layer_1=64,
)

U = CONFIG['user_embedding_dim']
V = CONFIG['item_embedding_dim']
E = CONFIG['embedding_dim']
E1 = CONFIG['Encoder_layer_1']
E2 = CONFIG['Encoder_layer_2']
D1 = CONFIG['Decoder_layer_1']
R = CONFIG['num_rating']
IN = U + V + E                 # 96  (full concat width)
LANES = 128                    # lane-padded width for every matmul operand
Y_LANE = IN                    # rating value parked at lane 96 of the features

# Packed parameter-slab row offsets (all multiples of 8 -> aligned views).
EMB_OFF = 0                    # 128 rows; rows 0..R-1 hold emb at lanes [64:96]
W1_OFF = EMB_OFF + LANES       # 128 rows; rows 0..95  = w1, cols 0..63  = E1
W2_OFF = W1_OFF + LANES        # 128 rows; rows 0..63  = w2, cols 0..31  = E2
W3_OFF = W2_OFF + LANES        # 128 rows; rows 0..31  = w3, cols 0..63  = D1
W4_OFF = W3_OFF + LANES        # 128 rows; rows 0..63  = w4, cols 0..95  = IN
B_OFF = W4_OFF + LANES         # 8 rows;  row 0..3 = b1..b4 (lane-padded)
P_ROWS = B_OFF + 8             # 648 rows total (~324 KiB)

BATCH = 16                     # demo batch -> grid=(1,), one grid step


# ----------------------------------------------------------------------------
# Kernel: whole forward pass for one batch block
# (embedding lookup, encoder, decoder, per-block SSE)
# ----------------------------------------------------------------------------
def ae_task_encoder_kernel(feat_ref, p_ref, dense_ref, sse_ref, *, use_bf16):
    f32 = jnp.float32
    feat = feat_ref[...]                                  # (BM, 128) f32
    bm = feat.shape[0]

    # Static, sublane-aligned views into the packed parameter slab (zero cost).
    emb = p_ref[EMB_OFF:W1_OFF, :]                        # (128, 128)
    w1 = p_ref[W1_OFF:W2_OFF, :]
    w2 = p_ref[W2_OFF:W3_OFF, :]
    w3 = p_ref[W3_OFF:W4_OFF, :]
    w4 = p_ref[W4_OFF:B_OFF, :]
    b1 = p_ref[B_OFF + 0:B_OFF + 1, :]                    # (1, 128) each
    b2 = p_ref[B_OFF + 1:B_OFF + 2, :]
    b3 = p_ref[B_OFF + 2:B_OFF + 3, :]
    b4 = p_ref[B_OFF + 3:B_OFF + 4, :]

    dot_dt = jnp.bfloat16 if use_bf16 else f32

    def mm(x, w):
        return jnp.dot(x.astype(dot_dt), w.astype(dot_dt),
                       preferred_element_type=f32)

    lane = jax.lax.broadcasted_iota(jnp.int32, (bm, LANES), 1)

    # --- rating embedding lookup: lane-dense one-hot matmul -------------------
    # Table rows are pre-shifted to lanes [64:96], so y_emb lands directly at
    # the concat position of the original_rep.
    y_idx = feat[:, Y_LANE:Y_LANE + 1].astype(jnp.int32)  # (BM, 1) values 0..R-1
    onehot = (lane == y_idx).astype(f32)                  # (BM, 128)
    y_emb = mm(onehot, emb)                               # (BM, 128), lanes 64..95

    # original_rep, zero-padded to 128 lanes (lanes 96..127 = 0).
    orig = jnp.where(lane < U + V, feat, 0.0) + y_emb

    # --- encoder (hidden dims lane-padded to 128; relu(0)=0 keeps pads exact) -
    h1 = jnp.maximum(mm(orig, w1) + b1, 0.0)              # (BM, 128)
    dense = jnp.maximum(mm(h1, w2) + b2, 0.0)             # (BM, 128)

    # --- decoder --------------------------------------------------------------
    d1 = jnp.maximum(mm(dense, w3) + b3, 0.0)             # (BM, 128)
    recons = jax.nn.sigmoid(mm(d1, w4) + b4)              # pad lanes -> 0.5

    # --- per-block SSE over the 96 real reconstruction lanes only -------------
    diff = jnp.where(lane < IN, recons - orig, 0.0)
    sse = jnp.sum(diff * diff)

    dense_ref[...] = dense                                # lane-dense full vst
    sse_ref[...] = jnp.broadcast_to(sse, sse_ref.shape)   # lane-dense full vst


# ----------------------------------------------------------------------------
# One-time parameter packing (call once, outside the per-forward hot path)
# ----------------------------------------------------------------------------
def prepare_params(params):
    """Pack embedding table, w1..w4 and biases into a single (648,128) slab."""
    f = lambda a: jnp.asarray(a, jnp.float32)
    slab = jnp.zeros((P_ROWS, LANES), jnp.float32)
    slab = slab.at[EMB_OFF:EMB_OFF + R, U + V:U + V + E].set(f(params['emb']))
    slab = slab.at[W1_OFF:W1_OFF + IN, :E1].set(f(params['w1']))
    slab = slab.at[W2_OFF:W2_OFF + E1, :E2].set(f(params['w2']))
    slab = slab.at[W3_OFF:W3_OFF + E2, :D1].set(f(params['w3']))
    slab = slab.at[W4_OFF:W4_OFF + D1, :IN].set(f(params['w4']))
    slab = slab.at[B_OFF + 0, :E1].set(f(params['b1']))
    slab = slab.at[B_OFF + 1, :E2].set(f(params['b2']))
    slab = slab.at[B_OFF + 2, :D1].set(f(params['b3']))
    slab = slab.at[B_OFF + 3, :IN].set(f(params['b4']))
    return slab


# ----------------------------------------------------------------------------
# Wrapper
# ----------------------------------------------------------------------------
@functools.partial(jax.jit, static_argnames=("block_rows", "use_bf16_dots"))
def ae_task_encoder_forward(support_x_u, support_x_v, support_y, param_slab,
                            block_rows=None, use_bf16_dots=False):
    B = support_x_u.shape[0]

    if block_rows is None:
        if B <= 4096:
            block_rows = B                     # one grid step: no per-step overhead
        else:
            block_rows = max(d for d in range(8, 4097, 8) if B % d == 0)
    assert B % block_rows == 0 and block_rows % 8 == 0, (B, block_rows)
    nb = B // block_rows

    # Single (B, 128) feature slab: [ x_u | x_v | 0*32 | rating | 0*31 ].
    feat = jnp.concatenate([
        support_x_u.astype(jnp.float32),
        support_x_v.astype(jnp.float32),
        jnp.zeros((B, E), jnp.float32),
        support_y.astype(jnp.float32).reshape(B, 1),        # 0..4 exact in f32
        jnp.zeros((B, LANES - IN - 1), jnp.float32),
    ], axis=1)

    kernel = functools.partial(ae_task_encoder_kernel, use_bf16=use_bf16_dots)

    dense_pad, sse = pl.pallas_call(
        kernel,
        grid=(nb,),
        out_shape=(
            jax.ShapeDtypeStruct((B, LANES), jnp.float32),
            jax.ShapeDtypeStruct((nb, 1, LANES), jnp.float32),
        ),
        in_specs=[
            pl.BlockSpec((block_rows, LANES), lambda i: (i, 0)),
            pl.BlockSpec((P_ROWS, LANES), lambda i: (0, 0)),     # replicated slab
        ],
        out_specs=(
            pl.BlockSpec((block_rows, LANES), lambda i: (i, 0)),
            pl.BlockSpec((1, 1, LANES), lambda i: (i, 0, 0)),
        ),
        compiler_params=pltpu.CompilerParams(
            dimension_semantics=("parallel",) if nb > 1 else ("arbitrary",)),
    )(feat, param_slab)

    loss = jnp.sum(sse[:, 0, 0]) / jnp.float32(B * IN)   # mean over full concat
    dense = dense_pad[:, :E2]                            # drop lane padding
    return loss, dense


# ----------------------------------------------------------------------------
# Deterministic parameter init + pure-JAX reference for sanity checking
# ----------------------------------------------------------------------------
def init_params(key):
    ks = jax.random.split(key, 9)

    def u(k, shape, fan_in):
        bound = 1.0 / jnp.sqrt(fan_in)
        return jax.random.uniform(k, shape, jnp.float32, -bound, bound)

    return dict(
        emb=jax.random.normal(ks[0], (R, E), jnp.float32),
        w1=u(ks[1], (IN, E1), IN), b1=u(ks[2], (E1,), IN),
        w2=u(ks[3], (E1, E2), E1), b2=u(ks[4], (E2,), E1),
        w3=u(ks[5], (E2, D1), E2), b3=u(ks[6], (D1,), E2),
        w4=u(ks[7], (D1, IN), D1), b4=u(ks[8], (IN,), D1),
    )


def reference_forward(xu, xv, y, p):
    y_emb = p['emb'][y]
    orig = jnp.concatenate([xu, xv, y_emb], axis=1)
    h1 = jax.nn.relu(orig @ p['w1'] + p['b1'])
    dense = jax.nn.relu(h1 @ p['w2'] + p['b2'])
    d1 = jax.nn.relu(dense @ p['w3'] + p['b3'])
    recons = jax.nn.sigmoid(d1 @ p['w4'] + p['b4'])
    loss = jnp.mean((recons - orig) ** 2)
    return loss, dense


# ----------------------------------------------------------------------------
if __name__ == "__main__":
    key = jax.random.PRNGKey(0)
    k_p, k_u, k_v, k_y = jax.random.split(key, 4)

    params = init_params(k_p)
    param_slab = prepare_params(params)        # built ONCE, outside the hot path

    support_x_u = jax.random.normal(k_u, (BATCH, U), jnp.float32)
    support_x_v = jax.random.normal(k_v, (BATCH, V), jnp.float32)
    support_y = jax.random.randint(k_y, (BATCH,), 0, R, jnp.int32)

    # B=16 -> block_rows=16, grid=(1,): a single overhead-free grid step.
    loss, dense = ae_task_encoder_forward(
        support_x_u, support_x_v, support_y, param_slab)
    jax.block_until_ready((loss, dense))

    ref_loss, ref_dense = reference_forward(
        support_x_u, support_x_v, support_y, params)
    assert jnp.allclose(loss, ref_loss, atol=1e-3, rtol=1e-3), (loss, ref_loss)
    assert jnp.allclose(dense, ref_dense, atol=1e-3, rtol=1e-3)

    print("KERNEL_OK")
</pallas_src>

<mosaic_0001>
module attributes {stable_mosaic.version = 11 : i64} {
  func.func @ae_task_encoder_kernel(%arg0: i32, %arg1: memref<16x128xf32, #tpu.memory_space<vmem>>, %arg2: memref<648x128xf32, #tpu.memory_space<vmem>>, %arg3: memref<16x128xf32, #tpu.memory_space<vmem>>, %arg4: memref<1x1x128xf32, #tpu.memory_space<vmem>>) attributes {dimension_semantics = [#tpu.dimension_semantics<arbitrary>], iteration_bounds = array<i64: 1>, scalar_prefetch = 0 : i64, scratch_operands = 0 : i64, tpu.core_type = #tpu.core_type<tc>, window_params = [{transform_indices = @transform_0, window_bounds = array<i64: 16, 128>}, {pipeline_mode = #tpu.pipeline_mode<synchronous>, transform_indices = @transform_1, window_bounds = array<i64: 648, 128>}, {transform_indices = @transform_2, window_bounds = array<i64: 16, 128>}, {transform_indices = @transform_3, window_bounds = array<i64: 1, 1, 128>}]} {
    %c0 = arith.constant 0 : index
    %c0_0 = arith.constant 0 : index
    %0 = vector.load %arg1[%c0, %c0_0] : memref<16x128xf32, #tpu.memory_space<vmem>>, vector<16x128xf32>
    %c0_1 = arith.constant 0 : index
    %c0_2 = arith.constant 0 : index
    %1 = vector.load %arg2[%c0_1, %c0_2] : memref<648x128xf32, #tpu.memory_space<vmem>>, vector<128x128xf32>
    %c128 = arith.constant 128 : index
    %c0_3 = arith.constant 0 : index
    %2 = vector.load %arg2[%c128, %c0_3] : memref<648x128xf32, #tpu.memory_space<vmem>>, vector<128x128xf32>
    %c256 = arith.constant 256 : index
    %c0_4 = arith.constant 0 : index
    %3 = vector.load %arg2[%c256, %c0_4] : memref<648x128xf32, #tpu.memory_space<vmem>>, vector<128x128xf32>
    %c384 = arith.constant 384 : index
    %c0_5 = arith.constant 0 : index
    %4 = vector.load %arg2[%c384, %c0_5] : memref<648x128xf32, #tpu.memory_space<vmem>>, vector<128x128xf32>
    %c512 = arith.constant 512 : index
    %c0_6 = arith.constant 0 : index
    %5 = vector.load %arg2[%c512, %c0_6] : memref<648x128xf32, #tpu.memory_space<vmem>>, vector<128x128xf32>
    %c640 = arith.constant 640 : index
    %c0_7 = arith.constant 0 : index
    %6 = vector.load %arg2[%c640, %c0_7] : memref<648x128xf32, #tpu.memory_space<vmem>>, vector<1x128xf32>
    %c641 = arith.constant 641 : index
    %c0_8 = arith.constant 0 : index
    %7 = vector.load %arg2[%c641, %c0_8] : memref<648x128xf32, #tpu.memory_space<vmem>>, vector<1x128xf32>
    %c642 = arith.constant 642 : index
    %c0_9 = arith.constant 0 : index
    %8 = vector.load %arg2[%c642, %c0_9] : memref<648x128xf32, #tpu.memory_space<vmem>>, vector<1x128xf32>
    %c643 = arith.constant 643 : index
    %c0_10 = arith.constant 0 : index
    %9 = vector.load %arg2[%c643, %c0_10] : memref<648x128xf32, #tpu.memory_space<vmem>>, vector<1x128xf32>
    %10 = tpu.iota {dimensions = array<i32: 1>} : vector<16x128xi32>
    %11 = vector.extract_strided_slice %0 {offsets = [0, 96], sizes = [16, 1], strides = [1, 1]} : vector<16x128xf32> to vector<16x1xf32>
    %12 = arith.fptosi %11 : vector<16x1xf32> to vector<16x1xi32>
    %13 = vector.broadcast %12 : vector<16x1xi32> to vector<16x128xi32>
    %14 = arith.cmpi eq, %10, %13 : vector<16x128xi32>
    %15 = arith.extui %14 : vector<16x128xi1> to vector<16x128xi32>
    %16 = arith.sitofp %15 : vector<16x128xi32> to vector<16x128xf32>
    %cst = arith.constant dense<0.000000e+00> : vector<16x128xf32>
    %17 = tpu.matmul %16, %1, %cst {dimension_numbers = #tpu.dot_dimension_numbers<[1], [0], [0], [1], [0, 0, 1, 1], [], []>} : vector<16x128xf32>, vector<128x128xf32>, vector<16x128xf32> -> vector<16x128xf32>
    %c64_i32 = arith.constant 64 : i32
    %18 = vector.broadcast %c64_i32 : i32 to vector<16x128xi32>
    %19 = arith.cmpi slt, %10, %18 : vector<16x128xi32>
    %cst_11 = arith.constant 0.000000e+00 : f32
    %20 = vector.broadcast %cst_11 : f32 to vector<16x128xf32>
    %21 = arith.select %19, %0, %20 : vector<16x128xi1>, vector<16x128xf32>
    %22 = arith.addf %21, %17 : vector<16x128xf32>
    %cst_12 = arith.constant dense<0.000000e+00> : vector<16x128xf32>
    %23 = tpu.matmul %22, %2, %cst_12 {dimension_numbers = #tpu.dot_dimension_numbers<[1], [0], [0], [1], [0, 0, 1, 1], [], []>} : vector<16x128xf32>, vector<128x128xf32>, vector<16x128xf32> -> vector<16x128xf32>
    %24 = vector.broadcast %6 : vector<1x128xf32> to vector<16x128xf32>
    %25 = arith.addf %23, %24 : vector<16x128xf32>
    %cst_13 = arith.constant 0.000000e+00 : f32
    %26 = vector.broadcast %cst_13 : f32 to vector<16x128xf32>
    %27 = arith.maximumf %25, %26 : vector<16x128xf32>
    %cst_14 = arith.constant dense<0.000000e+00> : vector<16x128xf32>
    %28 = tpu.matmul %27, %3, %cst_14 {dimension_numbers = #tpu.dot_dimension_numbers<[1], [0], [0], [1], [0, 0, 1, 1], [], []>} : vector<16x128xf32>, vector<128x128xf32>, vector<16x128xf32> -> vector<16x128xf32>
    %29 = vector.broadcast %7 : vector<1x128xf32> to vector<16x128xf32>
    %30 = arith.addf %28, %29 : vector<16x128xf32>
    %cst_15 = arith.constant 0.000000e+00 : f32
    %31 = vector.broadcast %cst_15 : f32 to vector<16x128xf32>
    %32 = arith.maximumf %30, %31 : vector<16x128xf32>
    %cst_16 = arith.constant dense<0.000000e+00> : vector<16x128xf32>
    %33 = tpu.matmul %32, %4, %cst_16 {dimension_numbers = #tpu.dot_dimension_numbers<[1], [0], [0], [1], [0, 0, 1, 1], [], []>} : vector<16x128xf32>, vector<128x128xf32>, vector<16x128xf32> -> vector<16x128xf32>
    %34 = vector.broadcast %8 : vector<1x128xf32> to vector<16x128xf32>
    %35 = arith.addf %33, %34 : vector<16x128xf32>
    %cst_17 = arith.constant 0.000000e+00 : f32
    %36 = vector.broadcast %cst_17 : f32 to vector<16x128xf32>
    %37 = arith.maximumf %35, %36 : vector<16x128xf32>
    %cst_18 = arith.constant dense<0.000000e+00> : vector<16x128xf32>
    %38 = tpu.matmul %37, %5, %cst_18 {dimension_numbers = #tpu.dot_dimension_numbers<[1], [0], [0], [1], [0, 0, 1, 1], [], []>} : vector<16x128xf32>, vector<128x128xf32>, vector<16x128xf32> -> vector<16x128xf32>
    %39 = vector.broadcast %9 : vector<1x128xf32> to vector<16x128xf32>
    %40 = arith.addf %38, %39 : vector<16x128xf32>
    %41 = arith.negf %40 : vector<16x128xf32>
    %42 = math.exp %41 : vector<16x128xf32>
    %cst_19 = arith.constant 1.000000e+00 : f32
    %43 = vector.broadcast %cst_19 : f32 to vector<16x128xf32>
    %44 = arith.addf %43, %42 : vector<16x128xf32>
    %45 = arith.divf %43, %44 : vector<16x128xf32>
    %c96_i32 = arith.constant 96 : i32
    %46 = vector.broadcast %c96_i32 : i32 to vector<16x128xi32>
    %47 = arith.cmpi slt, %10, %46 : vector<16x128xi32>
    %48 = arith.subf %45, %22 : vector<16x128xf32>
    %cst_20 = arith.constant 0.000000e+00 : f32
    %49 = vector.broadcast %cst_20 : f32 to vector<16x128xf32>
    %50 = arith.select %47, %48, %49 : vector<16x128xi1>, vector<16x128xf32>
    %51 = arith.mulf %50, %50 : vector<16x128xf32>
    %52 = vector.shape_cast %51 : vector<16x128xf32> to vector<1x16x128xf32>
    %cst_21 = arith.constant dense<0.000000e+00> : vector<1xf32>
    %53 = vector.multi_reduction <add>, %52, %cst_21 [1, 2] : vector<1x16x128xf32> to vector<1xf32>
    %54 = vector.shape_cast %53 : vector<1xf32> to vector<1x1x1xf32>
    %55 = vector.extract %54[0, 0, 0] : f32 from vector<1x1x1xf32>
    %c0_22 = arith.constant 0 : index
    %c0_23 = arith.constant 0 : index
    %56 = vector.load %arg3[%c0_22, %c0_23] : memref<16x128xf32, #tpu.memory_space<vmem>>, vector<16x128xf32>
    tpu.vector_store %arg3[%c0_22, %c0_23], %32 {strides = array<i32>} : memref<16x128xf32, #tpu.memory_space<vmem>>, vector<16x128xf32>,
    %57 = vector.broadcast %55 : f32 to vector<1x1x128xf32>
    %c0_24 = arith.constant 0 : index
    %c0_25 = arith.constant 0 : index
    %c0_26 = arith.constant 0 : index
    %58 = vector.load %arg4[%c0_24, %c0_25, %c0_26] : memref<1x1x128xf32, #tpu.memory_space<vmem>>, vector<1x1x128xf32>
    tpu.vector_store %arg4[%c0_24, %c0_25, %c0_26], %57 {strides = array<i32>} : memref<1x1x128xf32, #tpu.memory_space<vmem>>, vector<1x1x128xf32>,
    return
  }
  func.func @transform_0(%arg0: i32) -> (i32, i32) {
    %c0_i32 = arith.constant 0 : i32
    %c0_i32_0 = arith.constant 0 : i32
    return %arg0, %c0_i32 : i32, i32
  }
  func.func @transform_1(%arg0: i32) -> (i32, i32) {
    %c0_i32 = arith.constant 0 : i32
    %c0_i32_0 = arith.constant 0 : i32
    %c0_i32_1 = arith.constant 0 : i32
    return %c0_i32, %c0_i32_0 : i32, i32
  }
  func.func @transform_2(%arg0: i32) -> (i32, i32) {
    %c0_i32 = arith.constant 0 : i32
    %c0_i32_0 = arith.constant 0 : i32
    return %arg0, %c0_i32 : i32, i32
  }
  func.func @transform_3(%arg0: i32) -> (i32, i32, i32) {
    %c0_i32 = arith.constant 0 : i32
    %c0_i32_0 = arith.constant 0 : i32
    %c0_i32_1 = arith.constant 0 : i32
    return %arg0, %c0_i32, %c0_i32_0 : i32, i32, i32
  }
}

</mosaic_0001>

<bundles_post_ra>
// kernel: ae_task_encoder_forward.1
= control target key start
LH: loop header
LB: loop body
LE: loop exit
PB: predicated region body
PF: predicated region fallthrough
CT: control target
= control target key end

     0   :  { %9 = vsyncpa [#allocation3], 0  ;;  %s522_s0 = inlined_call_operand.vmem [shape: f32[16,128], index: 0, kind: input, shape index: {}]   ;;  %s523_s1 = inlined_call_operand.hbm [shape: f32[648,128], index: 1, kind: input, shape index: {}]   ;;  %s524_s2 = inlined_call_operand.hbm [shape: f32[16,128], index: 2, kind: output, shape index: {0}]   ;;  %s525_s3 = inlined_call_operand.vmem [shape: f32[1,1,128], index: 3, kind: output, shape index: {1}]  }
   0x1   :  { %10 = vsyncpa [#allocation4], 0  ;;  %s17_s14 = sshll.u32 %s523_s1, 4  ;;  %s449_s15 = smov [#allocation2]   ;;  %s18_s14 = int_to_ptr.hbm [resolvable:$true] %s17_s14 }
   0x2   :  { %s19_s16 = sshll.u32 %s449_s15, 4  ;;  %s450_s17 = smov 128   ;;  %s20_s16 = int_to_ptr.vmem [resolvable:$true] %s19_s16 }
   0x3   :  { %s451_s18 = smov 8  }
   0x4   :  { %25 = dma.hbm_to_vmem [thread:$0]  %s18_s14, 10368, %s20_s16, [#allocation3], %s450_s17, %s450_s17, %s451_s18  }
   0x5   :  { %445 = dma.done.wait [#allocation3], 10368  }
   0x6   :  { %446 = vsyncadd [#allocation3], 4294956928  ;;  %v452_v0 = vmov 96   ;;  %v484_v1 = vld [vmem:[%s522_s0] sm:$0xff]  ;;  %v489_v2 = vld [vmem:[%s522_s0 + $0x8] sm:$0xff]  ;;  %v116_v36 = vlaneseq  ;;  %v453_v43 = vmov 1.0  }
   0x7   :  { %384 = vset.pattern.permute.xlu0 %v452_v0  ;;  %v47_v3 = vld [vmem:[#allocation2 + $0x78] sm:$0xff]  ;;  %vm366_vm0 = vcmp.lt.s32.totalorder %v484_v1, 0  ;;  %v367_v4 = vceil.f32 %v484_v1  ;;  %v368_v5 = vfloor.f32 %v484_v1  ;;  %v46_v6 = vld [vmem:[#allocation2 + $0x70] sm:$0xff]  ;;  %v45_v7 = vld [vmem:[#allocation2 + $0x68] sm:$0xff]  ;;  %v372_v9 = vceil.f32 %v489_v2  ;;  %s454_s0 = smov [#allocation5]   ;;  %s327_s25 = sshll.u32 %s524_s2, 4  ;;  %s328_s25 = int_to_ptr.hbm [resolvable:$true] %s327_s25 }
   0x8   :  { %132 = vmatpush.msra.mxu0 %v47_v3  ;;  %v373_v10 = vfloor.f32 %v489_v2  ;;  %vm371_vm1 = vcmp.lt.s32.totalorder %v489_v2, 0  ;;  %v44_v12 = vld [vmem:[#allocation2 + $0x60] sm:$0xff]  ;;  %v43_v13 = vld [vmem:[#allocation2 + $0x58] sm:$0xff]  ;;  %v42_v15 = vld [vmem:[#allocation2 + $0x50] sm:$0xff]  ;;  %v497_v39 = vand.u32 127, %v116_v36  ;;  %s325_s22 = sshll.u32 %s454_s0, 4  ;;  %s326_s22 = int_to_ptr.vmem [resolvable:$true] %s325_s22 }
   0x9   :  { %v369_v8 = vsel %vm366_vm0, %v367_v4, %v368_v5  ;;  %v41_v17 = vld [vmem:[#allocation2 + $0x48] sm:$0xff]  ;;  %v40_v18 = vld [vmem:[#allocation2 + $0x40] sm:$0xff]  ;;  %v39_v19 = vld [vmem:[#allocation2 + $0x38] sm:$0xff] }
   0xa   :  { %133 = vmatpush.msra.mxu0 %v46_v6  ;;  %v370_v11 = vcvt.f32.s32 %v369_v8  ;;  %v374_v14 = vsel %vm371_vm1, %v372_v9, %v373_v10  ;;  %v38_v20 = vld [vmem:[#allocation2 + $0x30] sm:$0xff]  ;;  %v37_v21 = vld [vmem:[#allocation2 + $0x28] sm:$0xff]  ;;  %v36_v22 = vld [vmem:[#allocation2 + $0x20] sm:$0xff]  ;;  %vm155_vm4 = vcmp.lt.s32.totalorder %v497_v39, 64  ;;  %vm300_vm12 = vcmp.lt.s32.totalorder %v497_v39, 96 }
   0xb   :  { %v375_v16 = vcvt.f32.s32 %v374_v14  ;;  %v35_v23 = vld [vmem:[#allocation2 + $0x18] sm:$0xff]  ;;  %v34_v24 = vld [vmem:[#allocation2 + $0x10] sm:$0xff]  ;;  %v33_v25 = vld [vmem:[#allocation2 + $0x8] sm:$0xff]  ;;  %v156_v59 = vsel %vm155_vm4, %v484_v1, 0.0  ;;  %v157_v0 = vsel %vm155_vm4, %v489_v2, 0.0 }
   0xc   :  { %134 = vmatpush.msra.mxu0 %v45_v7  ;;  %121 = vperm.xlu0 %384, %v370_v11   ;;  %v32_v26 = vld [vmem:[#allocation2] sm:$0xff]  ;;  %v63_v27 = vld [vmem:[#allocation2 + $0xf8] sm:$0xff]  ;;  %v62_v28 = vld [vmem:[#allocation2 + $0xf0] sm:$0xff] }
   0xd   :  { %161 = vmatpush.msra.mxu1 %v63_v27  ;;  %v61_v29 = vld [vmem:[#allocation2 + $0xe8] sm:$0xff]  ;;  %v60_v30 = vld [vmem:[#allocation2 + $0xe0] sm:$0xff]  ;;  %v59_v31 = vld [vmem:[#allocation2 + $0xd8] sm:$0xff] }
   0xe   :  { %135 = vmatpush.msra.mxu0 %v44_v12  ;;  %v58_v32 = vld [vmem:[#allocation2 + $0xd0] sm:$0xff]  ;;  %v57_v33 = vld [vmem:[#allocation2 + $0xc8] sm:$0xff]  ;;  %v56_v34 = vld [vmem:[#allocation2 + $0xc0] sm:$0xff] }
   0xf   :  { %162 = vmatpush.msra.mxu1 %v62_v28  ;;  %v55_v35 = vld [vmem:[#allocation2 + $0xb8] sm:$0xff]  ;;  %v54_v37 = vld [vmem:[#allocation2 + $0xb0] sm:$0xff]  ;;  %v53_v38 = vld [vmem:[#allocation2 + $0xa8] sm:$0xff] }
  0x10   :  { %136 = vmatpush.msra.mxu0 %v43_v13  ;;  %v52_v40 = vld [vmem:[#allocation2 + $0xa0] sm:$0xff]  ;;  %v51_v42 = vld [vmem:[#allocation2 + $0x98] sm:$0xff]  ;;  %v50_v44 = vld [vmem:[#allocation2 + $0x90] sm:$0xff] }
  0x11   :  { %163 = vmatpush.msra.mxu1 %v61_v29  ;;  %v49_v46 = vld [vmem:[#allocation2 + $0x88] sm:$0xff]  ;;  %v48_v47 = vld [vmem:[#allocation2 + $0x80] sm:$0xff]  ;;  %v79_v48 = vld [vmem:[#allocation2 + $0x178] sm:$0xff] }
  0x12   :  { %137 = vmatpush.msra.mxu0 %v42_v15  ;;  %v78_v49 = vld [vmem:[#allocation2 + $0x170] sm:$0xff]  ;;  %187 = vmatpush.msra.mxu2 %v79_v48  ;;  %v77_v50 = vld [vmem:[#allocation2 + $0x168] sm:$0xff]  ;;  %v76_v51 = vld [vmem:[#allocation2 + $0x160] sm:$0xff] }
  0x13   :  { %164 = vmatpush.msra.mxu1 %v60_v30  ;;  %v75_v52 = vld [vmem:[#allocation2 + $0x158] sm:$0xff]  ;;  %v74_v53 = vld [vmem:[#allocation2 + $0x150] sm:$0xff]  ;;  %v73_v54 = vld [vmem:[#allocation2 + $0x148] sm:$0xff] }
  0x14   :  { %138 = vmatpush.msra.mxu0 %v41_v17  ;;  %124 = vperm.xlu0 %384, %v375_v16   ;;  %v72_v55 = vld [vmem:[#allocation2 + $0x140] sm:$0xff]  ;;  %v71_v56 = vld [vmem:[#allocation2 + $0x138] sm:$0xff]  ;;  %v70_v57 = vld [vmem:[#allocation2 + $0x130] sm:$0xff] }
  0x15   :  { %165 = vmatpush.msra.mxu1 %v59_v31  ;;  %188 = vmatpush.msra.mxu2 %v78_v49  ;;  %v69_v58 = vld [vmem:[#allocation2 + $0x128] sm:$0xff]  ;;  %v68_v60 = vld [vmem:[#allocation2 + $0x120] sm:$0xff]  ;;  %v67_v63 = vld [vmem:[#allocation2 + $0x118] sm:$0xff] }
  0x16   :  { %139 = vmatpush.msra.mxu0 %v40_v18  ;;  %v66_v5 = vld [vmem:[#allocation2 + $0x110] sm:$0xff]  ;;  %v65_v1 = vld [vmem:[#allocation2 + $0x108] sm:$0xff]  ;;  %v64_v6 = vld [vmem:[#allocation2 + $0x100] sm:$0xff] }
  0x17   :  { %166 = vmatpush.msra.mxu1 %v58_v32  ;;  %189 = vmatpush.msra.mxu2 %v77_v50  ;;  %v95_v7 = vld [vmem:[#allocation2 + $0x1f8] sm:$0xff]  ;;  %v94_v8 = vld [vmem:[#allocation2 + $0x1f0] sm:$0xff]  ;;  %v93_v9 = vld [vmem:[#allocation2 + $0x1e8] sm:$0xff] }
  0x18   :  { %140 = vmatpush.msra.mxu0 %v39_v19  ;;  %213 = vmatpush.msra.mxu3 %v95_v7  ;;  %v92_v10 = vld [vmem:[#allocation2 + $0x1e0] sm:$0xff]  ;;  %v91_v11 = vld [vmem:[#allocation2 + $0x1d8] sm:$0xff]  ;;  %v90_v2 = vld [vmem:[#allocation2 + $0x1d0] sm:$0xff] }
  0x19   :  { %167 = vmatpush.msra.mxu1 %v57_v33  ;;  %190 = vmatpush.msra.mxu2 %v76_v51  ;;  %v89_v12 = vld [vmem:[#allocation2 + $0x1c8] sm:$0xff]  ;;  %v88_v13 = vld [vmem:[#allocation2 + $0x1c0] sm:$0xff]  ;;  %v87_v14 = vld [vmem:[#allocation2 + $0x1b8] sm:$0xff] }
  0x1a   :  { %141 = vmatpush.msra.mxu0 %v38_v20  ;;  %214 = vmatpush.msra.mxu3 %v94_v8  ;;  %v385_v15 = vld [vmem:[#allocation2 + $0x280] ss:$0 sm:$0xff]  ;;  %v86_v16 = vld [vmem:[#allocation2 + $0x1b0] sm:$0xff]  ;;  %v85_v17 = vld [vmem:[#allocation2 + $0x1a8] sm:$0xff] }
  0x1b   :  { %168 = vmatpush.msra.mxu1 %v56_v34  ;;  %191 = vmatpush.msra.mxu2 %v75_v52  ;;  %v84_v20 = vld [vmem:[#allocation2 + $0x1a0] sm:$0xff]  ;;  %v81_v27 = vld [vmem:[#allocation2 + $0x188] sm:$0xff]  ;;  %v111_v29 = vld [vmem:[#allocation2 + $0x278] sm:$0xff] }
  0x1c   :  { %142 = vmatpush.msra.mxu0 %v37_v21  ;;  %215 = vmatpush.msra.mxu3 %v93_v9  ;;  %v80_v28 = vld [vmem:[#allocation2 + $0x180] sm:$0xff]  ;;  %v110_v30 = vld [vmem:[#allocation2 + $0x270] sm:$0xff]  ;;  %v109_v31 = vld [vmem:[#allocation2 + $0x268] sm:$0xff] }
  0x1d   :  { %169 = vmatpush.msra.mxu1 %v55_v35  ;;  %192 = vmatpush.msra.mxu2 %v74_v53  ;;  %v108_v32 = vld [vmem:[#allocation2 + $0x260] sm:$0xff]  ;;  %v107_v33 = vld [vmem:[#allocation2 + $0x258] sm:$0xff]  ;;  %v106_v34 = vld [vmem:[#allocation2 + $0x250] sm:$0xff] }
  0x1e   :  { %143 = vmatpush.msra.mxu0 %v36_v22  ;;  %216 = vmatpush.msra.mxu3 %v92_v10  ;;  %v83_v22 = vld [vmem:[#allocation2 + $0x198] sm:$0xff]  ;;  %v105_v35 = vld [vmem:[#allocation2 + $0x248] sm:$0xff]  ;;  %v104_v36 = vld [vmem:[#allocation2 + $0x240] sm:$0xff] }
  0x1f   :  { %170 = vmatpush.msra.mxu1 %v54_v37  ;;  %193 = vmatpush.msra.mxu2 %v73_v54  ;;  %v103_v37 = vld [vmem:[#allocation2 + $0x238] sm:$0xff]  ;;  %v98_v50 = vld [vmem:[#allocation2 + $0x210] sm:$0xff]  ;;  %v97_v51 = vld [vmem:[#allocation2 + $0x208] sm:$0xff] }
  0x20   :  { %144 = vmatpush.msra.mxu0 %v35_v23  ;;  %217 = vmatpush.msra.mxu3 %v91_v11  ;;  %v96_v52 = vld [vmem:[#allocation2 + $0x200] sm:$0xff] }
  0x21   :  { %171 = vmatpush.msra.mxu1 %v53_v38  ;;  %194 = vmatpush.msra.mxu2 %v72_v55  ;;  %v386_v38 = vld [vmem:[#allocation2 + $0x281] ss:$0 sm:$0xff]  ;;  %v387_v53 = vld [vmem:[#allocation2 + $0x282] ss:$0 sm:$0xff] }
  0x22   :  { %145 = vmatpush.msra.mxu0 %v34_v24  ;;  %218 = vmatpush.msra.mxu3 %v90_v2 }
  0x23   :  { %172 = vmatpush.msra.mxu1 %v52_v40  ;;  %195 = vmatpush.msra.mxu2 %v71_v56  ;;  %v102_v40 = vld [vmem:[#allocation2 + $0x230] sm:$0xff] }
  0x24   :  { %146 = vmatpush.msra.mxu0 %v33_v25  ;;  %219 = vmatpush.msra.mxu3 %v89_v12 }
  0x25   :  { %173 = vmatpush.msra.mxu1 %v51_v42  ;;  %196 = vmatpush.msra.mxu2 %v70_v57 }
  0x26   :  { %147 = vmatpush.msra.mxu0 %v32_v26  ;;  %220 = vmatpush.msra.mxu3 %v88_v13  ;;  %v82_v26 = vld [vmem:[#allocation2 + $0x190] sm:$0xff] }
  0x27   :  { %174 = vmatpush.msra.mxu1 %v50_v44  ;;  %197 = vmatpush.msra.mxu2 %v69_v58  ;;  %v100_v44 = vld [vmem:[#allocation2 + $0x220] sm:$0xff] }
  0x28   :  { %221 = vmatpush.msra.mxu3 %v87_v14  ;;  %239 = vmatpush.msrb.mxu0 %v111_v29 }
  0x29   :  { %175 = vmatpush.msra.mxu1 %v49_v46  ;;  %198 = vmatpush.msra.mxu2 %v68_v60  ;;  %v99_v46 = vld [vmem:[#allocation2 + $0x218] sm:$0xff]  ;;  %v388_v60 = vld [vmem:[#allocation2 + $0x283] ss:$0 sm:$0xff] }
  0x2a   :  { %222 = vmatpush.msra.mxu3 %v86_v16  ;;  %240 = vmatpush.msrb.mxu0 %v110_v30 }
  0x2b   :  { %176 = vmatpush.msra.mxu1 %v48_v47  ;;  %199 = vmatpush.msra.mxu2 %v67_v63 }
  0x2c   :  { %223 = vmatpush.msra.mxu3 %v85_v17  ;;  %241 = vmatpush.msrb.mxu0 %v109_v31 }
  0x2d   :  { %200 = vmatpush.msra.mxu2 %v66_v5  ;;  %350 = vmatpush.msrb.mxu1 %v111_v29 }
  0x2e   :  { %224 = vmatpush.msra.mxu3 %v84_v20  ;;  %242 = vmatpush.msrb.mxu0 %v108_v32 }
  0x2f   :  { %201 = vmatpush.msra.mxu2 %v65_v1  ;;  %351 = vmatpush.msrb.mxu1 %v110_v30 }
  0x30   :  { %225 = vmatpush.msra.mxu3 %v83_v22  ;;  %243 = vmatpush.msrb.mxu0 %v107_v33 }
  0x31   :  { %202 = vmatpush.msra.mxu2 %v64_v6  ;;  %352 = vmatpush.msrb.mxu1 %v109_v31 }
  0x32   :  { %226 = vmatpush.msra.mxu3 %v82_v26  ;;  %244 = vmatpush.msrb.mxu0 %v106_v34 }
  0x33   :  { %353 = vmatpush.msrb.mxu1 %v108_v32 }
  0x34   :  { %227 = vmatpush.msra.mxu3 %v81_v27  ;;  %245 = vmatpush.msrb.mxu0 %v105_v35 }
  0x35   :  { %354 = vmatpush.msrb.mxu1 %v107_v33 }
  0x36   :  { %228 = vmatpush.msra.mxu3 %v80_v28  ;;  %246 = vmatpush.msrb.mxu0 %v104_v36 }
  0x37   :  { %355 = vmatpush.msrb.mxu1 %v106_v34 }
  0x38   :  { %247 = vmatpush.msrb.mxu0 %v103_v37 }
  0x39   :  { %356 = vmatpush.msrb.mxu1 %v105_v35 }
  0x3a   :  { %248 = vmatpush.msrb.mxu0 %v102_v40 }
  0x3b   :  { %357 = vmatpush.msrb.mxu1 %v104_v36 }
  0x3d   :  { %358 = vmatpush.msrb.mxu1 %v103_v37 }
  0x3f   :  { %359 = vmatpush.msrb.mxu1 %v102_v40 }
  0x7e   :  { %v122_v41 = vpop.permute.xlu0 %121 }
  0x7f   :  { %vm126_vm2 = vcmp.eq.s32.totalorder %v497_v39, %v122_v41  ;;  %v101_v41 = vld [vmem:[#allocation2 + $0x228] sm:$0xff] }
  0x80   :  { %346 = vmatmul.msk.f32.vlgmr.msra.gmra.mxu0 %vm126_vm2, %v453_v43  ;;  %360 = vmatpush.msrb.mxu1 %v101_v41 }
  0x81   :  { %249 = vmatpush.msrb.mxu0 %v101_v41 }
  0x82   :  { %361 = vmatpush.msrb.mxu1 %v100_v44 }
  0x83   :  { %250 = vmatpush.msrb.mxu0 %v100_v44 }
  0x84   :  { %362 = vmatpush.msrb.mxu1 %v99_v46 }
  0x85   :  { %251 = vmatpush.msrb.mxu0 %v99_v46 }
  0x86   :  { %v125_v45 = vpop.permute.xlu0 %124  ;;  %363 = vmatpush.msrb.mxu1 %v98_v50 }
  0x87   :  { %vm127_vm3 = vcmp.eq.s32.totalorder %v497_v39, %v125_v45  ;;  %252 = vmatpush.msrb.mxu0 %v98_v50 }
  0x88   :  { %347 = vmatmul.msk.f32.gmra.mxu0 %vm127_vm3, %v453_v43  ;;  %364 = vmatpush.msrb.mxu1 %v97_v51 }
  0x89   :  { %253 = vmatpush.msrb.mxu0 %v97_v51 }
  0x8a   :  { %365 = vmatpush.msrb.mxu1 %v96_v52 }
  0x8b   :  { %254 = vmatpush.msrb.mxu0 %v96_v52 }
  0xfd   :  { %v149_v61 = vpop.f32.mrf.mxu0 }
  0xfe   :  { %v503_v62 = vadd.f32 %v156_v59, %v149_v61 }
 0x100   :  { %177 = vmatmul.f32.vlgmr.msra.gmra.mxu1 %v503_v62 }
 0x105   :  { %v152_v3 = vpop.f32.mrf.mxu0 }
 0x106   :  { %v507_v4 = vadd.f32 %v157_v0, %v152_v3 }
 0x108   :  { %180 = vmatmul.f32.gmra.mxu1 %v507_v4 }
 0x17d   :  { %v178_v18 = vpop.f32.mrf.mxu1 }
 0x17e   :  { %v179_v19 = vadd.f32 %v385_v15, %v178_v18 }
 0x180   :  { %v184_v21 = vmax.f32 %v179_v19, 0.0 }
 0x182   :  { %203 = vmatmul.f32.vlgmr.msra.gmra.mxu2 %v184_v21 }
 0x185   :  { %v181_v23 = vpop.f32.mrf.mxu1 }
 0x186   :  { %v182_v24 = vadd.f32 %v385_v15, %v181_v23 }
 0x188   :  { %v185_v25 = vmax.f32 %v182_v24, 0.0 }
 0x18a   :  { %206 = vmatmul.f32.gmra.mxu2 %v185_v25 }
 0x205   :  { %v204_v42 = vpop.f32.mrf.mxu2 }
 0x206   :  { %v205_v43 = vadd.f32 %v386_v38, %v204_v42 }
 0x208   :  { %v210_v45 = vmax.f32 %v205_v43, 0.0 }
 0x20a   :  { %317 = vst [vmem:[#allocation5] sm:$0xff] %v210_v45  ;;  %229 = vmatmul.f32.vlgmr.msra.gmra.mxu3 %v210_v45 }
 0x20d   :  { %v207_v47 = vpop.f32.mrf.mxu2 }
 0x20e   :  { %v208_v48 = vadd.f32 %v386_v38, %v207_v47 }
 0x210   :  { %v211_v49 = vmax.f32 %v208_v48, 0.0 }
 0x212   :  { %318 = vst [vmem:[#allocation5 + $0x8] sm:$0xff] %v211_v49  ;;  %232 = vmatmul.f32.gmra.mxu3 %v211_v49 }
 0x213   :  { %333 = dma.vmem_to_hbm [thread:$0]  %s326_s22, 256, %s328_s25, [#allocation4], %s450_s17, %s450_s17, %s451_s18  }
 0x28d   :  { %v230_v54 = vpop.f32.mrf.mxu3 }
 0x28e   :  { %v231_v55 = vadd.f32 %v387_v53, %v230_v54 }
 0x290   :  { %v236_v56 = vmax.f32 %v231_v55, 0.0 }
 0x292   :  { %255 = vmatmul.f32.vlgmr.msrb.gmra.mxu0 %v236_v56 }
 0x295   :  { %v233_v57 = vpop.f32.mrf.mxu3 }
 0x296   :  { %v234_v58 = vadd.f32 %v387_v53, %v233_v57 }
 0x298   :  { %v237_v59 = vmax.f32 %v234_v58, 0.0 }
 0x29a   :  { %258 = vmatmul.f32.vlgmr.msrb.gmra.mxu1 %v237_v59 }
 0x30f   :  { %v256_v61 = vpop.f32.mrf.mxu0 }
 0x310   :  { %v257_v63 = vadd.f32 %v388_v60, %v256_v61 }
 0x312   :  { %v348_v0 = vmul.f32 -1.442695, %v257_v63 }
 0x314   :  { %389 = vpow2.f32 %v348_v0 }
 0x317   :  { %v259_v3 = vpop.f32.mrf.mxu1 }
 0x318   :  { %v260_v5 = vadd.f32 %v388_v60, %v259_v3 }
 0x31a   :  { %v390_v1 = vpop.eup %389  ;;  %v349_v6 = vmul.f32 -1.442695, %v260_v5 }
 0x31b   :  { %v268_v7 = vadd.f32 1.0, %v390_v1 }
 0x31c   :  { %391 = vpow2.f32 %v349_v6 }
 0x31d   :  { %393 = vrcp.f32 %v268_v7  ;;  %v281_v13 = vand.u32 2147483648, %v268_v7  ;;  %vm275_vm6 = vweird.f32 %v268_v7  ;;  %v279_v15 = vand.u32 2147483647, %v268_v7 }
 0x31f   :  { %v282_v19 = vor.u32 1.1754944e-38, %v281_v13  ;;  %vm280_vm8 = vcmp.eq.f32.partialorder %v279_v15, 8.507059e+37 }
 0x322   :  { %v392_v8 = vpop.eup %391 }
 0x323   :  { %v394_v9 = vpop.eup %393  ;;  %v269_v10 = vadd.f32 1.0, %v392_v8 }
 0x324   :  { %v271_v11 = vmul.f32 %v394_v9, %v268_v7  ;;  %vm276_vm5 = vweird.f32 %v394_v9 }
 0x325   :  { %395 = vrcp.f32 %v269_v10  ;;  %vm277_vm7 = vmor %vm275_vm6, %vm276_vm5  ;;  %v296_v22 = vand.u32 2147483648, %v269_v10  ;;  %v294_v24 = vand.u32 2147483647, %v269_v10  ;;  %vm290_vm10 = vweird.f32 %v269_v10 }
 0x326   :  { %v272_v2 = vsub.f32 1.0, %v271_v11 }
 0x327   :  { %v297_v27 = vor.u32 1.1754944e-38, %v296_v22  ;;  %vm295_vm13 = vcmp.eq.f32.partialorder %v294_v24, 8.507059e+37 }
 0x328   :  { %v273_v12 = vmul.f32 %v394_v9, %v272_v2 }
 0x32a   :  { %v274_v14 = vadd.f32 %v394_v9, %v273_v12 }
 0x32b   :  { %v396_v16 = vpop.eup %395 }
 0x32c   :  { %v286_v17 = vmul.f32 %v396_v16, %v269_v10  ;;  %v278_v18 = vsel %vm277_vm7, %v394_v9, %v274_v14  ;;  %vm291_vm9 = vweird.f32 %v396_v16 }
 0x32d   :  { %v283_v21 = vsel %vm280_vm8, %v282_v19, %v278_v18  ;;  %vm292_vm11 = vmor %vm290_vm10, %vm291_vm9 }
 0x32e   :  { %v287_v20 = vsub.f32 1.0, %v286_v17  ;;  %v301_v26 = vsub.f32 %v283_v21, %v503_v62 }
 0x330   :  { %v288_v23 = vmul.f32 %v396_v16, %v287_v20  ;;  %v303_v31 = vsel %vm300_vm12, %v301_v26, 0.0 }
 0x331   :  { %v305_v33 = vmul.f32 %v303_v31, %v303_v31 }
 0x332   :  { %v289_v25 = vadd.f32 %v396_v16, %v288_v23 }
 0x334   :  { %v293_v28 = vsel %vm292_vm11, %v396_v16, %v289_v25 }
 0x335   :  { %v298_v29 = vsel %vm295_vm13, %v297_v27, %v293_v28 }
 0x336   :  { %v302_v30 = vsub.f32 %v298_v29, %v507_v4 }
 0x338   :  { %v304_v32 = vsel %vm300_vm12, %v302_v30, 0.0 }
 0x339   :  { %v306_v34 = vmul.f32 %v304_v32, %v304_v32 }
 0x33b   :  { %v307_v35 = vadd.f32 %v306_v34, %v305_v33 }
 0x33d   :  { %308 = vadd.xlane.f32.xlu1 %v307_v35 }
 0x3b0   :  { %v309_v39 = vpop.xlane.xlu1 %308 }
 0x3b1   :  { %v310_v62 = vrot.slane %v309_v39, 4 }
 0x3b3   :  { %v311_v4 = vadd.f32 %v310_v62, %v309_v39 }
 0x3b5   :  { %v312_v36 = vrot.slane %v311_v4, 2 }
 0x3b7   :  { %v313_v37 = vadd.f32 %v312_v36, %v311_v4 }
 0x3b9   :  { %v314_v38 = vrot.slane %v313_v37, 1 }
 0x3bb   :  { %v315_v40 = vadd.f32 %v314_v38, %v313_v37 }
 0x3bd   :  { %376 = vpush %v315_v40 }
 0x3ee   :  { %s377_s26 = spop %376 }
 0x3ef   :  { %v319_v41 = vstv %s377_s26 }
 0x3f0   :  { %320 = vst [vmem:[%s525_s3] sm:$0x1] %v319_v41 }
 0x3f1   :  { %447 = dma.done.wait [#allocation4], 256  }
 0x3f2   :  { %448 = vsyncadd [#allocation4], 4294967040 }
 0x3f3   :  { %342 = vsyncpa [#allocation3], 1 }
 0x3f4   :  { %343 = vsyncpa [#allocation4], 1 }

</bundles_post_ra>
